<compile_context>
chip_gen: v7x
topology: tpu7x:2x2x1
jax: 0.10.0
libtpu: 0.0.40
codegen_flags: <defaults>
</compile_context>

<pallas_src>
import jax
import jax.numpy as jnp
from jax.experimental import pallas as pl
from jax.experimental.pallas import tpu as pltpu

LN_EPS = 1e-5  # GPTNeoX final_layer_norm default eps


def ensemble_lm_head_kernel(h_ref, g_ref, b_ref, w_ref, out_ref, acc_ref, ln_ref):
    """Grid = (row tiles, vocab tiles, ensemble members); members innermost.

    h_ref:   (1, TN, H)   member hidden-state row tile
    g_ref:   (1, 1, H)    member LayerNorm gamma
    b_ref:   (1, 1, H)    member LayerNorm beta
    w_ref:   (1, TV, H)   member LM-head weight tile (native (V, H) layout)
    out_ref: (TN, TV)     averaged logits tile (written once, last member)
    acc_ref: (TN, TV) f32 VMEM ensemble accumulator
    ln_ref:  (M, TN, H)   VMEM LayerNorm cache (matmul operand dtype)
    """
    v = pl.program_id(1)
    m = pl.program_id(2)
    num_m = pl.num_programs(2)

    # LayerNorm in f32 (v5e has no bf16 VPU path), with the 1/M ensemble scale
    # folded in.  Computed once per (row tile, member) at the first vocab tile
    # and cached, instead of being recomputed V//TV times.
    @pl.when(v == 0)
    def _():
        h = h_ref[0].astype(jnp.float32)                              # (TN, H)
        mean = jnp.mean(h, axis=-1, keepdims=True)
        var = jnp.mean((h - mean) ** 2, axis=-1, keepdims=True)       # biased (torch LN)
        ln = (h - mean) * jax.lax.rsqrt(var + LN_EPS)
        ln = ln * g_ref[0].astype(jnp.float32) + b_ref[0].astype(jnp.float32)
        ln_ref[m] = (ln * (1.0 / num_m)).astype(ln_ref.dtype)

    # (TN, H) x (TV, H) contracting on H -> (TN, TV); bf16 operands, f32 acc.
    logits = jax.lax.dot_general(
        ln_ref[m], w_ref[0],
        dimension_numbers=(((1,), (1,)), ((), ())),
        preferred_element_type=jnp.float32,
    )

    @pl.when(m == 0)
    def _():
        acc_ref[...] = logits

    @pl.when(m > 0)
    def _():
        acc_ref[...] += logits

    @pl.when(m == num_m - 1)
    def _():
        out_ref[...] = acc_ref[...].astype(out_ref.dtype)


def _vmem_capacity_bytes():
    try:
        return int(pltpu.get_tpu_info().vmem_capacity_bytes)
    except Exception:
        return None


def _pick_tile(dim, target, align):
    """Largest tile <= target that is a multiple of `align` and divides `dim`
    exactly; falls back to the full dim (always legal for Mosaic blocks)."""
    if dim <= target:
        return dim
    for cand in range(target - target % align, 0, -align):
        if dim % cand == 0:
            return cand
    return dim


def ensemble_forward(input_ids, embed_in, ln_gamma, ln_beta, embed_out_w,
                     *, tn=None, tv=None):
    """input_ids:   (B, S) int32
    embed_in:    (M, V, H) per-member token embedding tables (any float dtype)
    ln_gamma:    (M, H)    per-member final LayerNorm weight
    ln_beta:     (M, H)    per-member final LayerNorm bias
    embed_out_w: (M, V, H) per-member LM head weight (nn.Linear, bias=False)
    returns averaged logits (B, S, V) float32
    """
    M, V, H = embed_in.shape
    B, S = input_ids.shape
    N = B * S

    # Glue: embedding gather per member, kept in the embedding's dtype (no
    # f32 upcast of the big tensors).
    hidden = jnp.take(embed_in, input_ids.reshape(-1), axis=1)        # (M, N, H)
    gamma = ln_gamma.reshape(M, 1, H)
    beta = ln_beta.reshape(M, 1, H)
    w = embed_out_w                                                   # (M, V, H), no transpose

    # Generation-aware tile sizes: v7x has 64 MiB VMEM (take ~half the
    # v5e/v6e 128 MiB tile).  Clamped to exact divisors of N / V.
    cap = _vmem_capacity_bytes()
    small_vmem = cap is not None and cap <= 64 * 1024 * 1024
    if tn is None:
        tn = _pick_tile(N, 256 if small_vmem else 512, 8)
    if tv is None:
        tv = _pick_tile(V, 1024 if small_vmem else 2048, 128)

    grid = (N // tn, V // tv, M)

    logits = pl.pallas_call(
        ensemble_lm_head_kernel,
        out_shape=jax.ShapeDtypeStruct((N, V), jnp.float32),
        grid_spec=pltpu.PrefetchScalarGridSpec(
            num_scalar_prefetch=0,
            grid=grid,
            in_specs=[
                pl.BlockSpec((1, tn, H), lambda n, v, m: (m, n, 0)),   # hidden
                pl.BlockSpec((1, 1, H), lambda n, v, m: (m, 0, 0)),    # gamma
                pl.BlockSpec((1, 1, H), lambda n, v, m: (m, 0, 0)),    # beta
                pl.BlockSpec((1, tv, H), lambda n, v, m: (m, v, 0)),   # LM-head weight
            ],
            out_specs=pl.BlockSpec((tn, tv), lambda n, v, m: (n, v)),
            scratch_shapes=[
                pltpu.VMEM((tn, tv), jnp.float32),   # ensemble accumulator
                pltpu.VMEM((M, tn, H), w.dtype),     # LayerNorm cache
            ],
        ),
        compiler_params=pltpu.CompilerParams(
            # Row tiles are independent -> "parallel" (v7x megacore).  The
            # vocab axis stays "arbitrary" because the LN cache is carried
            # across it; the member axis is the reduction.
            dimension_semantics=("parallel", "arbitrary", "arbitrary"),
            vmem_limit_bytes=None if cap is None else int(cap * 3 // 4),
        ),
    )(hidden, gamma, beta, w)

    return logits.reshape(B, S, V)


def reference_forward(input_ids, embed_in, ln_gamma, ln_beta, embed_out_w):
    """Pure-JAX f32 reference mirroring the PyTorch ensemble semantics."""
    M = embed_in.shape[0]
    outputs = None
    for m in range(M):
        h = embed_in[m][input_ids].astype(jnp.float32)                # (B, S, H)
        mean = jnp.mean(h, axis=-1, keepdims=True)
        var = jnp.mean((h - mean) ** 2, axis=-1, keepdims=True)
        ln = (h - mean) * jax.lax.rsqrt(var + LN_EPS)
        ln = ln * ln_gamma[m].astype(jnp.float32) + ln_beta[m].astype(jnp.float32)
        logits = ln @ embed_out_w[m].astype(jnp.float32).T            # (B, S, V)
        outputs = logits if outputs is None else outputs + logits
    return outputs / M


if __name__ == "__main__":
    # Small, module-consistent shapes.
    M = 3        # number of ensemble members
    B, S = 2, 8  # batch, sequence
    H = 32       # hidden size
    V = 128      # vocab size (lane-aligned)

    key = jax.random.PRNGKey(0)
    k_ids, k_emb, k_g, k_b, k_out = jax.random.split(key, 5)

    input_ids = jax.random.randint(k_ids, (B, S), 0, V, dtype=jnp.int32)
    # Params in bf16 (production layout); LN math stays f32 in-kernel.
    embed_in = (0.02 * jax.random.normal(k_emb, (M, V, H))).astype(jnp.bfloat16)
    ln_gamma = (1.0 + 0.01 * jax.random.normal(k_g, (M, H))).astype(jnp.bfloat16)
    ln_beta = (0.01 * jax.random.normal(k_b, (M, H))).astype(jnp.bfloat16)
    embed_out_w = (0.02 * jax.random.normal(k_out, (M, V, H))).astype(jnp.bfloat16)

    out = ensemble_forward(input_ids, embed_in, ln_gamma, ln_beta, embed_out_w)
    out = jax.block_until_ready(out)

    ref = reference_forward(input_ids, embed_in, ln_gamma, ln_beta, embed_out_w)
    assert out.shape == (B, S, V)
    assert out.dtype == jnp.float32
    # Tolerance dominated by the bf16 matmul-operand rounding (reference is f32).
    max_err = float(jnp.max(jnp.abs(out - ref)))
    assert jnp.allclose(out, ref, atol=2e-3, rtol=2e-2), f"mismatch vs reference: {max_err}"

    print("KERNEL_OK")
</pallas_src>

<mosaic_0001>
module attributes {stable_mosaic.version = 11 : i64} {
  func.func @ensemble_lm_head_kernel(%arg0: i32, %arg1: i32, %arg2: i32, %arg3: memref<1x16x32xbf16, #tpu.memory_space<vmem>>, %arg4: memref<1x1x32xbf16, #tpu.memory_space<vmem>>, %arg5: memref<1x1x32xbf16, #tpu.memory_space<vmem>>, %arg6: memref<1x128x32xbf16, #tpu.memory_space<vmem>>, %arg7: memref<16x128xf32, #tpu.memory_space<vmem>>, %arg8: memref<16x128xf32, #tpu.memory_space<vmem>>, %arg9: memref<3x16x32xbf16, #tpu.memory_space<vmem>>) attributes {dimension_semantics = [#tpu.dimension_semantics<parallel>, #tpu.dimension_semantics<arbitrary>, #tpu.dimension_semantics<arbitrary>], iteration_bounds = array<i64: 1, 1, 3>, scalar_prefetch = 0 : i64, scratch_operands = 2 : i64, tpu.core_type = #tpu.core_type<tc>, window_params = [{transform_indices = @transform_0, window_bounds = array<i64: 1, 16, 32>}, {transform_indices = @transform_1, window_bounds = array<i64: 1, 1, 32>}, {transform_indices = @transform_2, window_bounds = array<i64: 1, 1, 32>}, {transform_indices = @transform_3, window_bounds = array<i64: 1, 128, 32>}, {transform_indices = @transform_4, window_bounds = array<i64: 16, 128>}]} {
    %c0_i32 = arith.constant 0 : i32
    %0 = arith.cmpi eq, %arg1, %c0_i32 : i32
    %1 = arith.extui %0 : i1 to i32
    %c0_i32_0 = arith.constant 0 : i32
    %2 = arith.cmpi ne, %1, %c0_i32_0 : i32
    scf.if %2 {
      %c0_10 = arith.constant 0 : index
      %c0_11 = arith.constant 0 : index
      %c0_12 = arith.constant 0 : index
      %18 = vector.load %arg3[%c0_10, %c0_11, %c0_12] : memref<1x16x32xbf16, #tpu.memory_space<vmem>>, vector<1x16x32xbf16>
      %19 = vector.shape_cast %18 : vector<1x16x32xbf16> to vector<16x32xbf16>
      %20 = arith.extf %19 : vector<16x32xbf16> to vector<16x32xf32>
      %cst_13 = arith.constant dense<0.000000e+00> : vector<16xf32>
      %21 = vector.multi_reduction <add>, %20, %cst_13 [1] : vector<16x32xf32> to vector<16xf32>
      %22 = vector.shape_cast %21 : vector<16xf32> to vector<16x1xf32>
      %cst_14 = arith.constant 3.200000e+01 : f32
      %23 = vector.broadcast %cst_14 : f32 to vector<16x1xf32>
      %24 = arith.divf %22, %23 : vector<16x1xf32>
      %25 = vector.broadcast %24 : vector<16x1xf32> to vector<16x32xf32>
      %26 = arith.subf %20, %25 : vector<16x32xf32>
      %27 = arith.mulf %26, %26 : vector<16x32xf32>
      %cst_15 = arith.constant dense<0.000000e+00> : vector<16xf32>
      %28 = vector.multi_reduction <add>, %27, %cst_15 [1] : vector<16x32xf32> to vector<16xf32>
      %29 = vector.shape_cast %28 : vector<16xf32> to vector<16x1xf32>
      %cst_16 = arith.constant 3.200000e+01 : f32
      %30 = vector.broadcast %cst_16 : f32 to vector<16x1xf32>
      %31 = arith.divf %29, %30 : vector<16x1xf32>
      %32 = vector.broadcast %24 : vector<16x1xf32> to vector<16x32xf32>
      %33 = arith.subf %20, %32 : vector<16x32xf32>
      %cst_17 = arith.constant 9.99999974E-6 : f32
      %34 = vector.broadcast %cst_17 : f32 to vector<16x1xf32>
      %35 = arith.addf %31, %34 : vector<16x1xf32>
      %36 = math.rsqrt %35 : vector<16x1xf32>
      %37 = vector.broadcast %36 : vector<16x1xf32> to vector<16x32xf32>
      %38 = arith.mulf %33, %37 : vector<16x32xf32>
      %c0_18 = arith.constant 0 : index
      %c0_19 = arith.constant 0 : index
      %c0_20 = arith.constant 0 : index
      %39 = vector.load %arg4[%c0_18, %c0_19, %c0_20] : memref<1x1x32xbf16, #tpu.memory_space<vmem>>, vector<1x1x32xbf16>
      %40 = vector.shape_cast %39 : vector<1x1x32xbf16> to vector<1x32xbf16>
      %41 = arith.extf %40 : vector<1x32xbf16> to vector<1x32xf32>
      %42 = vector.broadcast %41 : vector<1x32xf32> to vector<16x32xf32>
      %43 = arith.mulf %38, %42 : vector<16x32xf32>
      %c0_21 = arith.constant 0 : index
      %c0_22 = arith.constant 0 : index
      %c0_23 = arith.constant 0 : index
      %44 = vector.load %arg5[%c0_21, %c0_22, %c0_23] : memref<1x1x32xbf16, #tpu.memory_space<vmem>>, vector<1x1x32xbf16>
      %45 = vector.shape_cast %44 : vector<1x1x32xbf16> to vector<1x32xbf16>
      %46 = arith.extf %45 : vector<1x32xbf16> to vector<1x32xf32>
      %47 = vector.broadcast %46 : vector<1x32xf32> to vector<16x32xf32>
      %48 = arith.addf %43, %47 : vector<16x32xf32>
      %cst_24 = arith.constant 0.333333343 : f32
      %49 = vector.broadcast %cst_24 : f32 to vector<16x32xf32>
      %50 = arith.mulf %48, %49 : vector<16x32xf32>
      %51 = arith.truncf %50 : vector<16x32xf32> to vector<16x32xbf16>
      %52 = arith.index_cast %arg2 : i32 to index
      %c0_25 = arith.constant 0 : index
      %c0_26 = arith.constant 0 : index
      %53 = vector.load %arg9[%52, %c0_25, %c0_26] : memref<3x16x32xbf16, #tpu.memory_space<vmem>>, vector<1x16x32xbf16>
      %54 = vector.shape_cast %53 : vector<1x16x32xbf16> to vector<16x32xbf16>
      %55 = vector.shape_cast %51 : vector<16x32xbf16> to vector<1x16x32xbf16>
      tpu.vector_store %arg9[%52, %c0_25, %c0_26], %55 {strides = array<i32>} : memref<3x16x32xbf16, #tpu.memory_space<vmem>>, vector<1x16x32xbf16>,
    } else {
    }
    %3 = arith.index_cast %arg2 : i32 to index
    %c0 = arith.constant 0 : index
    %c0_1 = arith.constant 0 : index
    %4 = vector.load %arg9[%3, %c0, %c0_1] : memref<3x16x32xbf16, #tpu.memory_space<vmem>>, vector<1x16x32xbf16>
    %5 = vector.shape_cast %4 : vector<1x16x32xbf16> to vector<16x32xbf16>
    %c0_2 = arith.constant 0 : index
    %c0_3 = arith.constant 0 : index
    %c0_4 = arith.constant 0 : index
    %6 = vector.load %arg6[%c0_2, %c0_3, %c0_4] : memref<1x128x32xbf16, #tpu.memory_space<vmem>>, vector<1x128x32xbf16>
    %7 = vector.shape_cast %6 : vector<1x128x32xbf16> to vector<128x32xbf16>
    %cst = arith.constant dense<0.000000e+00> : vector<16x128xf32>
    %8 = tpu.matmul %5, %7, %cst {dimension_numbers = #tpu.dot_dimension_numbers<[1], [1], [0], [0], [0, 0, 1, 0], [], []>} : vector<16x32xbf16>, vector<128x32xbf16>, vector<16x128xf32> -> vector<16x128xf32>
    %c0_i32_5 = arith.constant 0 : i32
    %9 = arith.cmpi eq, %arg2, %c0_i32_5 : i32
    %10 = arith.extui %9 : i1 to i32
    %c0_i32_6 = arith.constant 0 : i32
    %11 = arith.cmpi ne, %10, %c0_i32_6 : i32
    scf.if %11 {
      %c0_10 = arith.constant 0 : index
      %c0_11 = arith.constant 0 : index
      %18 = vector.load %arg8[%c0_10, %c0_11] : memref<16x128xf32, #tpu.memory_space<vmem>>, vector<16x128xf32>
      tpu.vector_store %arg8[%c0_10, %c0_11], %8 {strides = array<i32>} : memref<16x128xf32, #tpu.memory_space<vmem>>, vector<16x128xf32>,
    } else {
    }
    %c0_i32_7 = arith.constant 0 : i32
    %12 = arith.cmpi sgt, %arg2, %c0_i32_7 : i32
    %13 = arith.extui %12 : i1 to i32
    %c0_i32_8 = arith.constant 0 : i32
    %14 = arith.cmpi ne, %13, %c0_i32_8 : i32
    scf.if %14 {
      %c0_10 = arith.constant 0 : index
      %c0_11 = arith.constant 0 : index
      %18 = vector.load %arg8[%c0_10, %c0_11] : memref<16x128xf32, #tpu.memory_space<vmem>>, vector<16x128xf32>
      %19 = arith.addf %18, %8 : vector<16x128xf32>
      %c0_12 = arith.constant 0 : index
      %c0_13 = arith.constant 0 : index
      %20 = vector.load %arg8[%c0_12, %c0_13] : memref<16x128xf32, #tpu.memory_space<vmem>>, vector<16x128xf32>
      tpu.vector_store %arg8[%c0_12, %c0_13], %19 {strides = array<i32>} : memref<16x128xf32, #tpu.memory_space<vmem>>, vector<16x128xf32>,
    } else {
    }
    %c2_i32 = arith.constant 2 : i32
    %15 = arith.cmpi eq, %arg2, %c2_i32 : i32
    %16 = arith.extui %15 : i1 to i32
    %c0_i32_9 = arith.constant 0 : i32
    %17 = arith.cmpi ne, %16, %c0_i32_9 : i32
    scf.if %17 {
      %c0_10 = arith.constant 0 : index
      %c0_11 = arith.constant 0 : index
      %18 = vector.load %arg8[%c0_10, %c0_11] : memref<16x128xf32, #tpu.memory_space<vmem>>, vector<16x128xf32>
      %c0_12 = arith.constant 0 : index
      %c0_13 = arith.constant 0 : index
      %19 = vector.load %arg7[%c0_12, %c0_13] : memref<16x128xf32, #tpu.memory_space<vmem>>, vector<16x128xf32>
      tpu.vector_store %arg7[%c0_12, %c0_13], %18 {strides = array<i32>} : memref<16x128xf32, #tpu.memory_space<vmem>>, vector<16x128xf32>,
    } else {
    }
    return
  }
  func.func @transform_0(%arg0: i32, %arg1: i32, %arg2: i32) -> (i32, i32, i32) {
    %c0_i32 = arith.constant 0 : i32
    %c0_i32_0 = arith.constant 0 : i32
    return %arg2, %arg0, %c0_i32 : i32, i32, i32
  }
  func.func @transform_1(%arg0: i32, %arg1: i32, %arg2: i32) -> (i32, i32, i32) {
    %c0_i32 = arith.constant 0 : i32
    %c0_i32_0 = arith.constant 0 : i32
    %c0_i32_1 = arith.constant 0 : i32
    return %arg2, %c0_i32, %c0_i32_0 : i32, i32, i32
  }
  func.func @transform_2(%arg0: i32, %arg1: i32, %arg2: i32) -> (i32, i32, i32) {
    %c0_i32 = arith.constant 0 : i32
    %c0_i32_0 = arith.constant 0 : i32
    %c0_i32_1 = arith.constant 0 : i32
    return %arg2, %c0_i32, %c0_i32_0 : i32, i32, i32
  }
  func.func @transform_3(%arg0: i32, %arg1: i32, %arg2: i32) -> (i32, i32, i32) {
    %c0_i32 = arith.constant 0 : i32
    %c0_i32_0 = arith.constant 0 : i32
    return %arg2, %arg1, %c0_i32 : i32, i32, i32
  }
  func.func @transform_4(%arg0: i32, %arg1: i32, %arg2: i32) -> (i32, i32) {
    %c0_i32 = arith.constant 0 : i32
    return %arg0, %arg1 : i32, i32
  }
}

</mosaic_0001>

<bundles_post_ra>
// kernel: tpu_custom_call.1
= control target key start
LH: loop header
LB: loop body
LE: loop exit
PB: predicated region body
PF: predicated region fallthrough
CT: control target
= control target key end

     0   :  { %9 = vsyncpa [#allocation5], 0  ;;  %s808_s15 = smov 0   ;;  %s810_s16 = smov 0   ;;  %s914_s0 = inlined_call_operand.vmem [shape: bf16[3,16,32], index: 0, kind: input, shape index: {}]   ;;  %s915_s1 = inlined_call_operand.vmem [shape: bf16[3,1,32], index: 1, kind: input, shape index: {}]   ;;  %s916_s2 = inlined_call_operand.vmem [shape: bf16[3,1,32], index: 2, kind: input, shape index: {}]   ;;  %s917_s3 = inlined_call_operand.vmem [shape: bf16[3,128,32], index: 3, kind: input, shape index: {}]   ;;  %s918_s4 = inlined_call_operand.hbm [shape: f32[16,128], index: 4, kind: output, shape index: {}]  }
   0x1   :  { %s812_s17 = smov 0  }
   0x2 LB: > { %s616_s18 = sadd.s32 4294967295, %s776_s17   ;;  %s27_s19 = sadd.s32 1, %s772_s16  ;;  %s776_s17 = sphi %s812_s17, %s15_s17   ;;  %s772_s16 = sphi %s810_s16, %s921_s16   ;;  %s768_s15 = sphi %s808_s15, %s920_s15  }
   0x3   : > { %p28_p0 = scmp.ge.s32.totalorder %s27_s19, 3  ;;  %p619_p1 = scmp.ge.s32.totalorder %s776_s17, 1 }
   0x4   : > { %p224_p2 = scmp.lt.s32.totalorder %s776_s17, 4 }
   0x5   : > { %s923_s19 = smov (%p28_p0, %s27_s19), 0 }
   0x6   : > { %p225_p3 = pnand %p619_p1, %p224_p2 }
   0x7   : > { %p265_p4 = scmp.lt.s32.totalorder (!%p225_p3), %s768_s15, 2  ;;  %vm300_vm0 = vcmask (!%p225_p3), 261120   ;;  %v778_v6 = vmov (!%p225_p3), 0.0   ;;  %vm779_vm1 = vmmov (!%p225_p3), 0   ;;  %v330_v34 = vlaneseq (!%p225_p3)  ;;  %s624_s9 = sshll.u32 (!%p225_p3), %s768_s15, 3 }
   0x8   : > { %228 = sbr.rel (%p225_p3) target bundleno = 611 (0x263), region = 36  ;;  %657 = vmatprep.subr.bf16.mxu0 (!%p225_p3), %v778_v6  ;;  %673 = vmatprep.mubr.msk.bf16.mxu0 (!%p225_p3), %vm779_vm1, %v778_v6  ;;  %s348_s10 = scalar_lea.vmem (!%p225_p3), [#allocation3], %s624_s9 }
   0x9   : > { %v331_v38 = vshrl.u32 (!%p225_p3), %v330_v34, 7  ;;  %p635_p5 = scmp.ne.s32.totalorder (!%p225_p3), %s768_s15, 0 }
   0xb   : > { %v332_v42 = vsub.s32 (!%p225_p3), 0, %v331_v38 }
   0xf   : > { %s831_s20 = scalar_select %p265_p4, %s768_s15, 2 }
  0x11   : > { %s642_s21 = sshll.u32 %s831_s20, 3  ;;  %s643_s22 = sshll.u32 %s831_s20, 6 }
  0x12   : > { %s272_s25 = scalar_lea.vmem %s914_s0, %s642_s21  ;;  %s841_s28 = scalar_lea.vmem %s917_s3, %s643_s22 }
  0x13   : > { %v645_v0 = vld [vmem:[%s272_s25] sm:$0xff]   ;;  %v713_v8 = vld [vmem:[%s841_s28 + $0x8] sm:$0xff]   ;;  %v714_v10 = vld [vmem:[%s841_s28 + $0x10] sm:$0xff]   ;;  %s276_s5 = scalar_lea.vmem %s915_s1, %s831_s20  ;;  %s279_s8 = scalar_lea.vmem %s916_s2, %s831_s20 }
  0x14   : > { %v646_v1 = vunpack.c.l.bf16 %v645_v0  ;;  %v647_v2 = vunpack.c.h.bf16 %v645_v0  ;;  %v712_v5 = vld [vmem:[%s841_s28] sm:$0xff]   ;;  %v417_v9 = vsel %vm300_vm0, %v713_v8, 0  ;;  %v420_v11 = vsel %vm300_vm0, %v714_v10, 0  ;;  %v715_v12 = vld [vmem:[%s841_s28 + $0x18] sm:$0xff]   ;;  %v717_v26 = vld [vmem:[%s841_s28 + $0x28] sm:$0xff]  }
  0x15   : > { %v414_v7 = vsel %vm300_vm0, %v712_v5, 0  ;;  %v423_v13 = vsel %vm300_vm0, %v715_v12, 0  ;;  %v716_v24 = vld [vmem:[%s841_s28 + $0x20] sm:$0xff]   ;;  %v429_v27 = vsel %vm300_vm0, %v717_v26, 0  ;;  %v718_v28 = vld [vmem:[%s841_s28 + $0x30] sm:$0xff]   ;;  %v719_v30 = vld [vmem:[%s841_s28 + $0x38] sm:$0xff]  }
  0x16   : > { %v301_v3 = vsel %vm300_vm0, %v646_v1, 0.0  ;;  %v304_v4 = vsel %vm300_vm0, %v647_v2, 0.0  ;;  %658 = vmatpush3.bf16.xpose.msra.mxu0 %v414_v7  ;;  %v426_v25 = vsel %vm300_vm0, %v716_v24, 0  ;;  %v432_v29 = vsel %vm300_vm0, %v718_v28, 0  ;;  %v328_v39 = vld [vmem:[%s276_s5] sm:$0x1] }
  0x17   : > { %302 = vadd.xlane.f32.xlu0 %v301_v3  ;;  %659 = vmatprep.subr.bf16.mxu0 %v778_v6  ;;  %v435_v31 = vsel %vm300_vm0, %v719_v30, 0  ;;  %v329_v41 = vunpack.c.l.bf16 %v328_v39  ;;  %v336_v43 = vld [vmem:[%s279_s8] sm:$0x1] }
  0x18   : > { %v337_v45 = vunpack.c.l.bf16 %v336_v43 }
  0x19   : > { %v333_v44 = vrot.slane %v329_v41, %v332_v42 }
  0x1a   : > { %v341_v49 = vrot.slane %v337_v45, %v332_v42 }
  0x1b   : > { %305 = vadd.xlane.f32.xlu0 %v304_v4 }
  0x1e   : > { %660 = vmatpush3.bf16.xpose.msra.mxu0 %v417_v9 }
  0x1f   : > { %661 = vmatprep.subr.bf16.mxu0 %v778_v6 }
  0x26   : > { %662 = vmatpush3.bf16.xpose.msra.mxu0 %v420_v11 }
  0x27   : > { %663 = vmatprep.subr.bf16.mxu0 %v778_v6 }
  0x2e   : > { %664 = vmatpush3.bf16.xpose.msra.mxu0 %v423_v13 }
  0x2f   : > { %665 = vmatprep.subr.bf16.mxu0 %v778_v6 }
  0x36   : > { %666 = vmatpush3.bf16.xpose.msra.mxu0 %v426_v25 }
  0x37   : > { %667 = vmatprep.subr.bf16.mxu0 %v778_v6 }
  0x3e   : > { %668 = vmatpush3.bf16.xpose.msra.mxu0 %v429_v27 }
  0x3f   : > { %669 = vmatprep.subr.bf16.mxu0 %v778_v6 }
  0x46   : > { %670 = vmatpush3.bf16.xpose.msra.mxu0 %v432_v29 }
  0x47   : > { %671 = vmatprep.subr.bf16.mxu0 %v778_v6 }
  0x4e   : > { %672 = vmatpush3.bf16.xpose.msra.mxu0 %v435_v31 }
  0xa4   : > { %v303_v14 = vpop.xlane.xlu0 %302 }
  0xa5   : > { %v308_v15 = vmul.f32 0.03125, %v303_v14 }
  0xa7   : > { %v310_v16 = vsub.f32 %v646_v1, %v308_v15 }
  0xa8   : > { %v306_v17 = vpop.xlane.xlu0 %305 }
  0xa9   : > { %v309_v18 = vmul.f32 0.03125, %v306_v17  ;;  %v312_v19 = vmul.f32 %v310_v16, %v310_v16 }
  0xab   : > { %v311_v20 = vsub.f32 %v647_v2, %v309_v18  ;;  %v314_v21 = vsel %vm300_vm0, %v312_v19, 0.0 }
  0xac   : > { %315 = vadd.xlane.f32.xlu1 %v314_v21 }
  0xad   : > { %v313_v22 = vmul.f32 %v311_v20, %v311_v20 }
  0xaf   : > { %v317_v23 = vsel %vm300_vm0, %v313_v22, 0.0 }
  0xb0   : > { %318 = vadd.xlane.f32.xlu1 %v317_v23 }
 0x139   : > { %v316_v32 = vpop.xlane.xlu1 %315 }
 0x13a   : > { %v320_v33 = vmul.f32 0.03125, %v316_v32 }
 0x13c   : > { %v322_v35 = vadd.f32 1e-05, %v320_v33 }
 0x13d   : > { %v319_v36 = vpop.xlane.xlu1 %318 }
 0x13e   : > { %720 = vrsqrt.f32 %v322_v35  ;;  %v321_v37 = vmul.f32 0.03125, %v319_v36 }
 0x140   : > { %v323_v40 = vadd.f32 1e-05, %v321_v37 }
 0x142   : > { %722 = vrsqrt.f32 %v323_v40 }
 0x148   : > { %v721_v46 = vpop.eup %720 }
 0x149   : > { %v326_v47 = vmul.f32 %v721_v46, %v310_v16 }
 0x14b   : > { %v334_v48 = vmul.f32 %v333_v44, %v326_v47 }
 0x14c   : > { %v723_v50 = vpop.eup %722 }
 0x14d   : > { %v327_v51 = vmul.f32 %v723_v50, %v311_v20  ;;  %v342_v53 = vadd.f32 %v341_v49, %v334_v48 }
 0x14f   : > { %v335_v52 = vmul.f32 %v333_v44, %v327_v51  ;;  %v344_v55 = vmul.f32 0.33333334, %v342_v53 }
 0x151   : > { %v343_v54 = vadd.f32 %v341_v49, %v335_v52 }
 0x153   : > { %v345_v56 = vmul.f32 0.33333334, %v343_v54 }
 0x155   : > { %v346_v57 = vpack.c.bf16 %v345_v56, %v344_v55 }
 0x157   : > { %349 = vst.msk [vmem:[%s348_s10] sm:$0xff] %vm300_vm0, %v346_v57 }
 0x15e   : > { %v352_v58 = vld [vmem:[%s348_s10] sm:$0xff] }
 0x15f   : > { %674 = vmatmul.mubr.msk.bf16.vlgmr.msra.gmra.mrb[0].mxu0 %vm300_vm0, %v352_v58 }
 0x22f   : > { %481 = sbr.rel (%p635_p5) target bundleno = 566 (0x236), region = 44 }
 0x232   : > { %v471_v59 = vpop.f32.mrb[0].mxu0 }
 0x233   : > { %v675_v60 = vpop.f32.mrb[1].mxu0  ;;  %482 = vst [vmem:[#allocation2] sm:$0xff] (!%p635_p5), %v471_v59 }
 0x234   : > { %v474_v61 = vpop.f32.mrb[2].mxu0 }
 0x235   : > { %v676_v62 = vpop.f32.mrb[3].mxu0  ;;  %483 = vst [vmem:[#allocation2 + $0x8] sm:$0xff] (!%p635_p5), %v474_v61 }
 0x236 PF: > { %p636_p6 = scmp.le.s32.totalorder %s768_s15, 0 }
 0x238   : > { %487 = sbr.rel (%p636_p6) target bundleno = 576 (0x240), region = 48 }
 0x23a   : > { %v488_v63 = vld [vmem:[#allocation2] sm:$0xff] (!%p636_p6) }
 0x23b   : > { %v490_v1 = vadd.f32 (!%p636_p6), %v488_v63, %v471_v59 }
 0x23c   : > { %v489_v0 = vld [vmem:[#allocation2 + $0x8] sm:$0xff] (!%p636_p6) }
 0x23d   : > { %v491_v2 = vadd.f32 (!%p636_p6), %v489_v0, %v474_v61  ;;  %492 = vst [vmem:[#allocation2] sm:$0xff] (!%p636_p6), %v490_v1 }
 0x23f   : > { %493 = vst [vmem:[#allocation2 + $0x8] sm:$0xff] %v491_v2 }
 0x240 PF: > { %p637_p7 = scmp.ne.s32.totalorder %s768_s15, 2 }
 0x242   : > { %497 = sbr.rel (%p637_p7) target bundleno = 585 (0x249), region = 52 }
 0x245   : > { %v498_v3 = vld [vmem:[#allocation2] sm:$0xff] (!%p637_p7) }
 0x246   : > { %v499_v4 = vld [vmem:[#allocation2 + $0x8] sm:$0xff] (!%p637_p7)  ;;  %500 = vst [vmem:[#allocation4] sm:$0xff] (!%p637_p7), %v498_v3 }
 0x247   : > { %501 = vst [vmem:[#allocation4 + $0x8] sm:$0xff] (!%p637_p7), %v499_v4 }
 0x249 PF: > { %p879_p8 = scmp.eq.s32.totalorder %s616_s18, 2  ;;  %s780_s12 = smov [#allocation4]  }
 0x24a   : > { %s512_s13 = sshll.u32 %s780_s12, 4  ;;  %s513_s13 = int_to_ptr.vmem [resolvable:$true] %s512_s13 }
 0x24b   : > { %s724_s14 = scalar_lea.vmem %s513_s13, 256  ;;  %p731_p12 = scmp.lt.s32.totalorder %s513_s13, %s513_s13 }
 0x24c   : > { %p725_p9 = scmp.ne.s32.totalorder %s513_s13, %s724_s14  ;;  %p732_p13 = scmp.lt.s32.totalorder %s724_s14, %s724_s14 }
 0x24e   : > { %p726_p10 = pnand %p725_p9, %p879_p8  ;;  %p733_p0 = por %p732_p13, %p731_p12 }
 0x250   : > { %p727_p11 = pneg %p726_p10 }
 0x252   : > { %p734_p1 = pnand %p733_p0, %p727_p11 }
 0x254   : > { %737 = shalt.err (!%p734_p1)
}
 0x255   : > { %s738_s18 = scalar_lea.hbm %s918_s4, 256 }
 0x256   : > { %p739_p2 = scmp.ne.s32.totalorder %s918_s4, %s738_s18  ;;  %p744_p5 = scmp.lt.u32.totalorder %s738_s18, %s918_s4 }
 0x258   : > { %p740_p3 = pnand %p739_p2, %p879_p8 }
 0x25a   : > { %p741_p4 = pneg %p740_p3 }
 0x25c   : > { %p746_p6 = pnand %p744_p5, %p741_p4 }
 0x25e   : > { %749 = shalt.err (!%p746_p6)
}
 0x25f   : > { %s781_s25 = smov 128   ;;  %s782_s26 = smov 8  }
 0x260   : > { %678 = dma.vmem_to_hbm [thread:$0]  (%p879_p8), %s513_s13, 256, %s918_s4, [#allocation5], %s781_s25, %s781_s25, %s782_s26  }
 0x261   : > { %763 = dma.done.wait (%p879_p8), [#allocation5], 256  }
 0x262   : > { %765 = vsyncadd (%p879_p8), [#allocation5], 4294967040 }
 0x263 PF: > { %s15_s17 = sadd.s32 1, %s776_s17   ;;  %s920_s15 = smov %s772_s16 }
 0x264   : > { %p12_p7 = scmp.ge.s32.totalorder %s15_s17, 5   ;;  %s921_s16 = smov %s923_s19 }
 0x266   :  { %14 = sbr.rel (!%p12_p7) target bundleno = 2 (0x2), region = 91 }
 0x26d   :  { %528 = vsyncpa [#allocation5], 1 }
 0x26e   :  { %530 = vsyncpa [#allocation5 + $0x1], 1 }

</bundles_post_ra>
